<compile_context>
chip_gen: v5e
topology: v5e:2x2
jax: 0.10.0
libtpu: 0.0.40
codegen_flags: <defaults>
</compile_context>

<pallas_src>
import math

import jax
import jax.numpy as jnp
from jax import lax
from jax.experimental import pallas as pl
from jax.experimental.pallas import tpu as pltpu

_LANES = 128   # vreg lane width
_SUB = 128     # rows per inner-loop chunk: 128x128 f32 = 16 vregs live


def _round_up(v, m):
    return ((v + m - 1) // m) * m


def _chip_config():
    """Best-effort (tensorcores_per_chip, vmem_capacity_bytes) with safe defaults."""
    ncores, vmem = 1, 64 * 1024 * 1024
    try:
        info = pltpu.get_tpu_info()
        vmem = int(getattr(info, "vmem_capacity_bytes", vmem))
        for attr in ("num_tensorcores", "tensorcore_count", "num_cores", "core_count"):
            v = getattr(info, attr, None)
            if v is None:
                continue
            try:
                v = int(v)
            except Exception:
                continue
            if v > 0:
                ncores = v
                break
    except Exception:
        pass
    # TODO(synk): if TpuInfo exposes no TensorCore count, v7x runs single-core
    # here; wire proper chip-version detection once the field name is known.
    return max(1, min(int(ncores), 2)), max(int(vmem), 16 * 1024 * 1024)


def _make_stats_kernel(tr, rows, spc, full_stats, may_need_mask):
    """Build a kernel accumulating per-lane partial sums over a (tr,128) block.

    Per-core accumulator acc_ref layout ((8*nstats, 128) f32):
      rows  0..7  : sum|x|
      rows  8..15 : sum(x)        (full_stats only)
      rows 16..23 : sum(x^2)      (full_stats only)
      rows 24..31 : count(x != 0) (full_stats only)
    The output BlockSpec returns the same block for every step of the inner
    ("arbitrary") grid axis, so acc_ref stays resident in VMEM and acts as the
    accumulator (zero-init at inner step 0).
    """
    nfull = tr // _SUB
    rem = tr % _SUB                       # multiple of 8 (tr is)
    nstats = 4 if full_stats else 1

    def kernel(x_ref, acc_ref):
        step = pl.program_id(1)

        @pl.when(step == 0)
        def _():
            acc_ref[...] = jnp.zeros_like(acc_ref)

        def accumulate(row0):
            # row0 is None on the fast (fully in-bounds) path; otherwise it is
            # the traced global row index of the block's first row, and global
            # rows >= `rows` are masked to zero (partial last block or fully
            # out-of-range duplicate block on the last core).
            masked = row0 is not None
            if masked:
                # Hoisted once per block: JAX does not CSE broadcast_in_dim.
                iota_sub = lax.broadcasted_iota(jnp.int32, (_SUB, _LANES), 0)

            def chunk(r_off, nrows):
                xc = x_ref[pl.ds(r_off, nrows), :].astype(jnp.float32)
                if masked:
                    if nrows == _SUB:
                        gidx = iota_sub + (row0 + r_off)
                    else:
                        gidx = lax.broadcasted_iota(
                            jnp.int32, (nrows, _LANES), 0) + (row0 + r_off)
                    xc = jnp.where(gidx < rows, xc, 0.0)
                x3 = xc.reshape(nrows // 8, 8, _LANES)     # whole (8,128) tiles
                p_abs = jnp.sum(jnp.abs(x3), axis=0)       # plain vreg adds
                if not full_stats:
                    return (p_abs,)
                p_sum = jnp.sum(x3, axis=0)
                p_sq = jnp.sum(x3 * x3, axis=0)
                p_cnt = jnp.sum((x3 != 0.0).astype(jnp.float32), axis=0)
                return (p_abs, p_sum, p_sq, p_cnt)

            zero = jnp.zeros((8, _LANES), jnp.float32)
            acc = (zero,) * nstats
            if nfull > 1:
                def body(k, carry):
                    r = pl.multiple_of(k * _SUB, _SUB)
                    return tuple(a + b for a, b in zip(carry, chunk(r, _SUB)))
                acc = lax.fori_loop(0, nfull, body, acc, unroll=2)
            elif nfull == 1:
                acc = tuple(a + b for a, b in zip(acc, chunk(0, _SUB)))
            if rem:
                acc = tuple(a + b for a, b in zip(acc, chunk(nfull * _SUB, rem)))
            for s in range(nstats):
                acc_ref[8 * s:8 * (s + 1), :] += acc[s]

        if not may_need_mask:
            # Every block of every core is fully in-bounds: no mask anywhere.
            accumulate(None)
        else:
            gblk = pl.program_id(0) * spc + step     # un-clamped global block
            row0 = gblk * tr
            is_full = row0 + tr <= rows

            @pl.when(is_full)
            def _():
                accumulate(None)

            @pl.when(jnp.logical_not(is_full))
            def _():
                accumulate(row0)

    return kernel


def _lsq_stats(x, full_stats, *, force_cores=None, force_block_rows=None):
    """Run the reduction kernel; returns (sum_abs[, sum_x, sum_sq, cnt_nz], numel).

    force_cores / force_block_rows are testing knobs to exercise the multi-core
    and multi-block code paths on any chip.
    """
    numel = x.size
    nstats = 4 if full_stats else 1
    xf = jnp.ravel(x)                     # metadata-only for contiguous inputs
    itemsize = xf.dtype.itemsize
    row_align = max(8, 32 // max(itemsize, 1))   # 8 f32 / 16 bf16 / 32 int8 rows

    main = (numel // _LANES) * _LANES
    rows = main // _LANES

    if rows >= row_align:
        # Common case (numel % 128 == 0): whole tensor, no copy.  Otherwise the
        # lane-aligned prefix goes through the kernel and the <128-element tail
        # is reduced in plain jnp below.
        # TODO(synk): for numel % 128 != 0 the prefix slice may still copy; a
        # zero-copy 1-D-input kernel was judged not worth the layout risk.
        x2d = (xf if main == numel else xf[:main]).reshape(rows, _LANES)

        ncores, vmem_cap = _chip_config()
        if force_cores is not None:
            ncores = max(1, min(int(force_cores), 2))

        # Block sizing: use <= half of physical VMEM for the double-buffered
        # input(s); cap at 16 MiB/block (v5e/v6e) and at budget/(2*ncores)
        # per-core on small-VMEM parts (v7x).
        vmem_budget = max(8 * 2 ** 20, vmem_cap // 2)
        block_bytes = min(16 * 2 ** 20,
                          max(512 * 1024, vmem_budget // (2 * max(ncores, 1))))
        if force_block_rows is not None:
            max_tr = max(row_align, _round_up(int(force_block_rows), row_align))
        else:
            max_tr = max(row_align,
                         (block_bytes // (_LANES * itemsize)) // row_align * row_align)

        tr = min((rows // row_align) * row_align, max_tr)   # tr <= rows, aligned
        nblocks = pl.cdiv(rows, tr)
        ncores = max(1, min(ncores, nblocks))
        spc = pl.cdiv(nblocks, ncores)                      # inner steps per core
        may_need_mask = (rows % tr != 0) or (spc * ncores != nblocks)

        blk_bytes = tr * _LANES * itemsize
        vmem_limit = int(min(max(2 * ncores * blk_bytes + (4 << 20), 16 << 20),
                             64 << 20))

        if spc * ncores == nblocks:
            in_index = lambda c, i: (c * spc + i, 0)
        else:
            # Clamp the last core's duplicate trailing block(s) into range; their
            # contribution is fully masked out in the kernel.
            in_index = lambda c, i: (jnp.minimum(c * spc + i, nblocks - 1), 0)

        flops_per_el = 8 if full_stats else 2

        acc = pl.pallas_call(
            _make_stats_kernel(tr, rows, spc, full_stats, may_need_mask),
            out_shape=jax.ShapeDtypeStruct((ncores * 8 * nstats, _LANES),
                                           jnp.float32),
            grid_spec=pltpu.PrefetchScalarGridSpec(
                num_scalar_prefetch=0,
                grid=(ncores, spc),
                in_specs=[pl.BlockSpec((tr, _LANES), in_index)],
                out_specs=pl.BlockSpec((8 * nstats, _LANES), lambda c, i: (c, 0)),
            ),
            compiler_params=pltpu.CompilerParams(
                dimension_semantics=("parallel", "arbitrary"),
                vmem_limit_bytes=vmem_limit),
            cost_estimate=pl.CostEstimate(
                flops=flops_per_el * main,
                transcendentals=0,
                bytes_accessed=main * itemsize
                + ncores * 8 * nstats * _LANES * 4),
        )(x2d)

        # Tiny glue reduce: combine per-core slabs + sublane/lane partials.
        sums = jnp.sum(acc.reshape(ncores, nstats, 8 * _LANES), axis=(0, 2))
        tail_start = main
    else:
        # Tensor smaller than one aligned block row-group: plain jnp is fine.
        sums = jnp.zeros((nstats,), jnp.float32)
        tail_start = 0

    if tail_start != numel:
        t = xf[tail_start:].astype(jnp.float32)       # < 128*row_align elements
        t_stats = [jnp.sum(jnp.abs(t))]
        if full_stats:
            t_stats += [jnp.sum(t), jnp.sum(t * t),
                        jnp.sum((t != 0.0).astype(jnp.float32))]
        sums = sums + jnp.stack(t_stats)

    if full_stats:
        return sums[0], sums[1], sums[2], sums[3], numel
    return sums[0], numel


def lsq_observer_forward(x, scale, counter, *, Qn, Qp,
                         calibrate_count=1, momentum=0.1, name="LSQObserver"):
    """Functional equivalent of LSQObserver.forward (mode='lsq').

    Returns (returned_scale, new_scale_buffer, new_counter, g).

    counter / calibrate_count are Python ints (module buffer state), so the
    branch below is a Python-level branch exactly like the eager PyTorch
    module; do not jit across this function without lifting it into lax.cond.
    """
    numel = x.size

    if counter < calibrate_count:
        if counter == 0:
            sum_abs, sum_x, sum_sq, cnt_nz, _ = _lsq_stats(x, full_stats=True)
            # scale_func for mode='lsq' (LSQ paper init): 2 * mean(|x|) / sqrt(Qp)
            new_scale = 2.0 * (sum_abs / numel) / math.sqrt(Qp)
            # torch.std_mean(x[x.nonzero(as_tuple=True)]) — unbiased std over the
            # nonzero elements (calibration printout only).  Combined on the host
            # in float64 to avoid f32 catastrophic cancellation; denominators
            # clamped so <=1 nonzero element does not produce inf/NaN.
            # NOTE: float() forces a device sync here, exactly like the eager
            # PyTorch module's print during calibration.
            cn = float(cnt_nz)
            mean_nz = float(sum_x) / max(cn, 1.0)
            var_nz = (float(sum_sq) - cn * mean_nz * mean_nz) / max(cn - 1.0, 1.0)
            std_nz = math.sqrt(max(var_nz, 0.0))
            print(f"\n{name}:")
            print(f"\tinput val: std:{std_nz}, mean:{mean_nz}")
            print(f"\tscale val: {float(new_scale)}")
        else:
            # Steady calibration path: only sum|x| is needed.
            sum_abs, _ = _lsq_stats(x, full_stats=False)
            lsq_scale = 2.0 * (sum_abs / numel) / math.sqrt(Qp)
            new_scale = (1.0 - momentum) * scale + momentum * lsq_scale
        counter = counter + 1
    else:
        # Past calibration the PyTorch module touches neither scale nor x stats.
        new_scale = scale

    g = 1.0 / math.sqrt(numel * Qp)
    # grad_scale(scale, g): forward value is the scale itself; only gradients
    # are rescaled by g.
    # TODO(synk): grad_scale's gradient rescaling is an autograd-only trick with
    # no forward-pass effect, so only the forward value is produced.
    returned_scale = new_scale
    return returned_scale, new_scale, counter, g


if __name__ == "__main__":
    key = jax.random.PRNGKey(0)
    k1, k2, k3, k4 = jax.random.split(key, 4)
    x = jax.random.normal(k1, (2, 4, 16, 16), dtype=jnp.float32)   # NCHW

    Qn, Qp = -128, 127                 # 8-bit signed quantization range
    init_scale = jnp.float32(1.0)      # deterministic scale-buffer init
    counter = 0                        # buffer 'counter' starts at 0

    # --- kernel-level check of the reduction against pure JAX ---
    sum_abs, sum_x, sum_sq, cnt_nz, numel = _lsq_stats(x, full_stats=True)
    jax.block_until_ready(sum_abs)
    assert jnp.allclose(sum_abs, jnp.sum(jnp.abs(x)), rtol=1e-5), (
        float(sum_abs), float(jnp.sum(jnp.abs(x))))
    assert jnp.allclose(sum_x, jnp.sum(x), rtol=1e-4, atol=1e-2)
    assert jnp.allclose(sum_sq, jnp.sum(x * x), rtol=1e-5)
    assert int(cnt_nz) == int(jnp.sum(x != 0.0))
    assert numel == x.size

    # --- calibration step (counter == 0): full-stats kernel ---
    scale0, buf0, counter, g = lsq_observer_forward(
        x, init_scale, counter, Qn=Qn, Qp=Qp, calibrate_count=2, momentum=0.1)
    jax.block_until_ready(scale0)
    ref0 = 2.0 * jnp.mean(jnp.abs(x)) / math.sqrt(Qp)
    assert jnp.allclose(scale0, ref0, rtol=1e-5, atol=1e-6), (
        float(scale0), float(ref0))
    assert counter == 1
    assert abs(g - 1.0 / math.sqrt(x.size * Qp)) < 1e-12

    # --- second calibration step (counter == 1): sum|x|-only kernel ---
    x2 = jax.random.normal(k2, (2, 4, 16, 16), dtype=jnp.float32)
    scale1, buf1, counter, g = lsq_observer_forward(
        x2, buf0, counter, Qn=Qn, Qp=Qp, calibrate_count=2, momentum=0.1)
    jax.block_until_ready(scale1)
    ref1 = 0.9 * ref0 + 0.1 * (2.0 * jnp.mean(jnp.abs(x2)) / math.sqrt(Qp))
    assert jnp.allclose(scale1, ref1, rtol=1e-5, atol=1e-6), (
        float(scale1), float(ref1))
    assert counter == 2

    # --- past calibration: scale passes through, no kernel launched ---
    scale2, buf2, counter, g = lsq_observer_forward(
        x2, buf1, counter, Qn=Qn, Qp=Qp, calibrate_count=2, momentum=0.1)
    assert jnp.allclose(scale2, buf1)
    assert counter == 2

    # --- odd-sized input: partial last block (row mask) + <128-element tail ---
    x3 = jax.random.normal(k3, (3, 5, 7, 11), dtype=jnp.float32)  # 1155 elems
    s_abs3, s_x3, s_sq3, cnt3, n3 = _lsq_stats(x3, full_stats=True)
    jax.block_until_ready(s_abs3)
    assert jnp.allclose(s_abs3, jnp.sum(jnp.abs(x3)), rtol=1e-5)
    assert jnp.allclose(s_x3, jnp.sum(x3), rtol=1e-4, atol=1e-2)
    assert jnp.allclose(s_sq3, jnp.sum(x3 * x3), rtol=1e-5)
    assert int(cnt3) == int(jnp.sum(x3 != 0.0))
    assert n3 == x3.size

    # --- forced 2-core split (v7x code path), even block count, full stats ---
    x4 = jax.random.normal(k4, (4096, 128), dtype=jnp.float32)
    s_abs4, s_x4, s_sq4, cnt4, _ = _lsq_stats(
        x4, full_stats=True, force_cores=2, force_block_rows=1024)
    jax.block_until_ready(s_abs4)
    assert jnp.allclose(s_abs4, jnp.sum(jnp.abs(x4)), rtol=1e-5)
    assert jnp.allclose(s_x4, jnp.sum(x4), rtol=1e-3, atol=0.5)
    assert jnp.allclose(s_sq4, jnp.sum(x4 * x4), rtol=1e-5)
    assert int(cnt4) == int(jnp.sum(x4 != 0.0))

    # --- forced 2-core split, uneven block count: clamped duplicate block +
    #     partial last block + unrolled inner loop, sum|x|-only hot path ---
    x5 = jax.random.normal(jax.random.PRNGKey(7), (3000, 128), dtype=jnp.float32)
    s_abs5, _ = _lsq_stats(x5, full_stats=False, force_cores=2,
                           force_block_rows=1024)
    jax.block_until_ready(s_abs5)
    assert jnp.allclose(s_abs5, jnp.sum(jnp.abs(x5)), rtol=1e-5)

    print("KERNEL_OK")
</pallas_src>

<mosaic_0001>
module attributes {stable_mosaic.version = 11 : i64} {
  func.func @kernel(%arg0: i32, %arg1: i32, %arg2: memref<16x128xf32, #tpu.memory_space<vmem>>, %arg3: memref<32x128xf32, #tpu.memory_space<vmem>>) attributes {dimension_semantics = [#tpu.dimension_semantics<parallel>, #tpu.dimension_semantics<arbitrary>], iteration_bounds = array<i64: 1, 1>, scalar_prefetch = 0 : i64, scratch_operands = 0 : i64, tpu.core_type = #tpu.core_type<tc>, window_params = [{transform_indices = @transform_0, window_bounds = array<i64: 16, 128>}, {transform_indices = @transform_1, window_bounds = array<i64: 32, 128>}]} {
    %c0_i32 = arith.constant 0 : i32
    %0 = arith.cmpi eq, %arg1, %c0_i32 : i32
    %1 = arith.extui %0 : i1 to i32
    %c0_i32_0 = arith.constant 0 : i32
    %2 = arith.cmpi ne, %1, %c0_i32_0 : i32
    scf.if %2 {
      %cst_20 = arith.constant 0.000000e+00 : f32
      %32 = vector.broadcast %cst_20 : f32 to vector<32x128xf32>
      %c0_21 = arith.constant 0 : index
      %c0_22 = arith.constant 0 : index
      %33 = vector.load %arg3[%c0_21, %c0_22] : memref<32x128xf32, #tpu.memory_space<vmem>>, vector<32x128xf32>
      tpu.vector_store %arg3[%c0_21, %c0_22], %32 {strides = array<i32>} : memref<32x128xf32, #tpu.memory_space<vmem>>, vector<32x128xf32>,
    } else {
    }
    %cst = arith.constant 0.000000e+00 : f32
    %3 = vector.broadcast %cst : f32 to vector<8x128xf32>
    %c0 = arith.constant 0 : index
    %c0_1 = arith.constant 0 : index
    %4 = vector.load %arg2[%c0, %c0_1] : memref<16x128xf32, #tpu.memory_space<vmem>>, vector<16x128xf32>
    %5 = vector.shape_cast %4 : vector<16x128xf32> to vector<2x8x128xf32>
    %6 = math.absf %5 : vector<2x8x128xf32>
    %cst_2 = arith.constant dense<0.000000e+00> : vector<8x128xf32>
    %7 = vector.multi_reduction <add>, %6, %cst_2 [0] : vector<2x8x128xf32> to vector<8x128xf32>
    %cst_3 = arith.constant dense<0.000000e+00> : vector<8x128xf32>
    %8 = vector.multi_reduction <add>, %5, %cst_3 [0] : vector<2x8x128xf32> to vector<8x128xf32>
    %9 = arith.mulf %5, %5 : vector<2x8x128xf32>
    %cst_4 = arith.constant dense<0.000000e+00> : vector<8x128xf32>
    %10 = vector.multi_reduction <add>, %9, %cst_4 [0] : vector<2x8x128xf32> to vector<8x128xf32>
    %cst_5 = arith.constant 0.000000e+00 : f32
    %11 = vector.broadcast %cst_5 : f32 to vector<2x8x128xf32>
    %12 = arith.cmpf one, %5, %11 : vector<2x8x128xf32>
    %13 = arith.extui %12 : vector<2x8x128xi1> to vector<2x8x128xi32>
    %14 = arith.sitofp %13 : vector<2x8x128xi32> to vector<2x8x128xf32>
    %cst_6 = arith.constant dense<0.000000e+00> : vector<8x128xf32>
    %15 = vector.multi_reduction <add>, %14, %cst_6 [0] : vector<2x8x128xf32> to vector<8x128xf32>
    %16 = arith.addf %3, %7 : vector<8x128xf32>
    %17 = arith.addf %3, %8 : vector<8x128xf32>
    %18 = arith.addf %3, %10 : vector<8x128xf32>
    %19 = arith.addf %3, %15 : vector<8x128xf32>
    %c0_7 = arith.constant 0 : index
    %c0_8 = arith.constant 0 : index
    %20 = vector.load %arg3[%c0_7, %c0_8] : memref<32x128xf32, #tpu.memory_space<vmem>>, vector<8x128xf32>
    %21 = arith.addf %20, %16 : vector<8x128xf32>
    %c0_9 = arith.constant 0 : index
    %c0_10 = arith.constant 0 : index
    %22 = vector.load %arg3[%c0_9, %c0_10] : memref<32x128xf32, #tpu.memory_space<vmem>>, vector<8x128xf32>
    tpu.vector_store %arg3[%c0_9, %c0_10], %21 {strides = array<i32>} : memref<32x128xf32, #tpu.memory_space<vmem>>, vector<8x128xf32>,
    %c8 = arith.constant 8 : index
    %c0_11 = arith.constant 0 : index
    %23 = vector.load %arg3[%c8, %c0_11] : memref<32x128xf32, #tpu.memory_space<vmem>>, vector<8x128xf32>
    %24 = arith.addf %23, %17 : vector<8x128xf32>
    %c8_12 = arith.constant 8 : index
    %c0_13 = arith.constant 0 : index
    %25 = vector.load %arg3[%c8_12, %c0_13] : memref<32x128xf32, #tpu.memory_space<vmem>>, vector<8x128xf32>
    tpu.vector_store %arg3[%c8_12, %c0_13], %24 {strides = array<i32>} : memref<32x128xf32, #tpu.memory_space<vmem>>, vector<8x128xf32>,
    %c16 = arith.constant 16 : index
    %c0_14 = arith.constant 0 : index
    %26 = vector.load %arg3[%c16, %c0_14] : memref<32x128xf32, #tpu.memory_space<vmem>>, vector<8x128xf32>
    %27 = arith.addf %26, %18 : vector<8x128xf32>
    %c16_15 = arith.constant 16 : index
    %c0_16 = arith.constant 0 : index
    %28 = vector.load %arg3[%c16_15, %c0_16] : memref<32x128xf32, #tpu.memory_space<vmem>>, vector<8x128xf32>
    tpu.vector_store %arg3[%c16_15, %c0_16], %27 {strides = array<i32>} : memref<32x128xf32, #tpu.memory_space<vmem>>, vector<8x128xf32>,
    %c24 = arith.constant 24 : index
    %c0_17 = arith.constant 0 : index
    %29 = vector.load %arg3[%c24, %c0_17] : memref<32x128xf32, #tpu.memory_space<vmem>>, vector<8x128xf32>
    %30 = arith.addf %29, %19 : vector<8x128xf32>
    %c24_18 = arith.constant 24 : index
    %c0_19 = arith.constant 0 : index
    %31 = vector.load %arg3[%c24_18, %c0_19] : memref<32x128xf32, #tpu.memory_space<vmem>>, vector<8x128xf32>
    tpu.vector_store %arg3[%c24_18, %c0_19], %30 {strides = array<i32>} : memref<32x128xf32, #tpu.memory_space<vmem>>, vector<8x128xf32>,
    return
  }
  func.func @transform_0(%arg0: i32, %arg1: i32) -> (i32, i32) {
    %c1_i32 = arith.constant 1 : i32
    %0 = arith.muli %arg0, %c1_i32 : i32
    %1 = arith.addi %0, %arg1 : i32
    %c0_i32 = arith.constant 0 : i32
    %c0_i32_0 = arith.constant 0 : i32
    return %1, %c0_i32 : i32, i32
  }
  func.func @transform_1(%arg0: i32, %arg1: i32) -> (i32, i32) {
    %c0_i32 = arith.constant 0 : i32
    %c0_i32_0 = arith.constant 0 : i32
    return %arg0, %c0_i32 : i32, i32
  }
}

</mosaic_0001>

<bundles_post_ra>
// kernel: tpu_custom_call.1
= control target key start
LH: loop header
LB: loop body
LE: loop exit
PB: predicated region body
PF: predicated region fallthrough
CT: control target
= control target key end

     0   :  { %6 = vsyncpa [#allocation3], 0  ;;  %s176_s0 = inlined_call_operand.hbm [shape: f32[16,128], index: 0, kind: input, shape index: {}]   ;;  %s177_s1 = inlined_call_operand.hbm [shape: f32[32,128], index: 1, kind: output, shape index: {}]  }
   0x1   :  { %7 = vsyncpa [#allocation4], 0  ;;  %s16_s8 = sshll.u32 %s176_s0, 4  ;;  %s149_s9 = smov [#allocation2]   ;;  %s17_s8 = int_to_ptr.hbm [resolvable:$true] %s16_s8 }
   0x2   :  { %s18_s10 = sshll.u32 %s149_s9, 4  ;;  %s150_s11 = smov 128   ;;  %s19_s10 = int_to_ptr.vmem [resolvable:$true] %s18_s10 }
   0x3   :  { %s151_s12 = smov 8  }
   0x4   :  { %24 = dma.hbm_to_vmem [thread:$0]  %s17_s8, 256, %s19_s10, [#allocation3], %s150_s11, %s150_s11, %s151_s12  }
   0x5   :  { %145 = dma.done.wait [#allocation3], 256  }
   0x6   :  { %146 = vsyncadd [#allocation3], 4294967040  ;;  %v39_v0 = vld [vmem:[#allocation2] sm:$0xff]  ;;  %v40_v1 = vld [vmem:[#allocation2 + $0x8] sm:$0xff]  ;;  %v152_v8 = vmov 0.0   ;;  %s153_s0 = smov [#allocation5]  }
   0x7   :  { %v41_v2 = vand.u32 2147483647, %v39_v0  ;;  %v42_v3 = vand.u32 2147483647, %v40_v1  ;;  %v44_v4 = vadd.f32 %v40_v1, %v39_v0  ;;  %v45_v5 = vmul.f32 %v39_v0, %v39_v0  ;;  %s75_s13 = sshll.u32 %s153_s0, 4  ;;  %s77_s16 = sshll.u32 %s177_s1, 4  ;;  %s76_s13 = int_to_ptr.vmem [resolvable:$true] %s75_s13  ;;  %s78_s16 = int_to_ptr.hbm [resolvable:$true] %s77_s16 }
   0x8   :  { %v46_v6 = vmul.f32 %v40_v1, %v40_v1  ;;  %vm48_vm0 = vcmp.ne.f32.partialorder %v39_v0, 0.0  ;;  %vm49_vm1 = vcmp.ne.f32.partialorder %v40_v1, 0.0 }
   0x9   :  { %v43_v7 = vadd.f32 %v42_v3, %v41_v2  ;;  %v90_v9 = vsel %vm48_vm0, 1.0, %v152_v8  ;;  %v91_v10 = vsel %vm49_vm1, 1.0, %v152_v8  ;;  %64 = vst [vmem:[#allocation5 + $0x8] sm:$0xff] %v44_v4 }
   0xa   :  { %v47_v11 = vadd.f32 %v46_v6, %v45_v5  ;;  %v54_v12 = vadd.f32 %v91_v10, %v90_v9 }
   0xb   :  { %61 = vst [vmem:[#allocation5] sm:$0xff] %v43_v7 }
   0xc   :  { %67 = vst [vmem:[#allocation5 + $0x10] sm:$0xff] %v47_v11 }
   0xd   :  { %70 = vst [vmem:[#allocation5 + $0x18] sm:$0xff] %v54_v12 }
   0xe   :  { %83 = dma.vmem_to_hbm [thread:$0]  %s76_s13, 512, %s78_s16, [#allocation4], %s150_s11, %s150_s11, %s151_s12  }
   0xf   :  { %147 = dma.done.wait [#allocation4], 512  }
  0x10   :  { %148 = vsyncadd [#allocation4], 4294966784 }
  0x11   :  { %88 = vsyncpa [#allocation3], 1 }
  0x12   :  { %89 = vsyncpa [#allocation4], 1 }

</bundles_post_ra>
